<compile_context>
chip_gen: v7x
topology: tpu7x:2x2x1
jax: 0.10.0
libtpu: 0.0.40
codegen_flags: <defaults>
</compile_context>

<pallas_src>
import functools

import jax
import jax.numpy as jnp
from jax.experimental import pallas as pl
from jax.experimental.pallas import tpu as pltpu


# Parity decomposition of ConvTranspose2d(3x3, stride=2, padding=1, output_padding=1):
#   out[2a+py, 2b+px] = sum over listed taps of X[a+dr, b+dc] * W_t[:, :, kh, kw]
# Entries: (plane = 2*py + px, dr, dc, kh, kw)
_S2_TAPS = (
    (0, 0, 0, 1, 1),
    (1, 0, 1, 1, 0), (1, 0, 0, 1, 2),
    (2, 1, 0, 0, 1), (2, 0, 0, 2, 1),
    (3, 1, 1, 0, 0), (3, 1, 0, 0, 2), (3, 0, 1, 2, 0), (3, 0, 0, 2, 2),
)

_EPS = 1e-5


def _round_up(x, m):
    return (x + m - 1) // m * m


# =============================================================================== kernels
def _stage1_kernel(x_ref, skip_ref, w_ref, b_ref, gam_ref, bet_ref, alpha_ref,
                   mask_ref, o_ref, *, h, w, wp, groups, eps):
    """Stride-1 ConvTranspose(3x3, pad=1) on the concat input + GroupNorm + PReLU.

    x_ref:    (1, 2*Cin, Fp)  bf16 zero-padded, lane-flattened concat(x, skip_late)
    skip_ref: (1, Cin, Fp)    bf16 padded-flat skip for conv2 (pass-through)
    w_ref:    (9, Cmid, 2*Cin) bf16 standard-conv weights, tap-major (k = kh*3 + kw)
    b/gam/bet:(Cmid, 1) f32,  alpha_ref: (1,1) f32 SMEM,  mask_ref: (1, L) f32
    o_ref:    (1, Cmid + Cin, Fp) bf16 -- [0:Cmid] = padded-flat activation (zeros on the
              border), [Cmid:] = pass-through skip.  This is exactly stage 2's input layout.
    """
    cmid = w_ref.shape[1]
    L = h * wp
    fp = o_ref.shape[-1]

    x = x_ref[0]                                   # (2*Cin, Fp) bf16
    acc = jnp.zeros((cmid, L), jnp.float32)
    for kh in range(3):
        for kw in range(3):
            k = kh * 3 + kw
            s = kh * wp + kw
            acc = acc + jnp.dot(w_ref[k], x[:, s:s + L],
                                preferred_element_type=jnp.float32)
    acc = acc + b_ref[...]                         # conv bias

    mask = mask_ref[...]                           # 1.0 at valid columns (j < w)
    alpha = alpha_ref[0, 0]
    cpg = cmid // groups
    inv_cnt = 1.0 / float(cpg * h * w)

    # zero the activation half first: the border / pad columns must be 0 for stage 2.
    o_ref[0, 0:cmid, :] = jnp.zeros((cmid, fp), o_ref.dtype)

    for g in range(groups):
        lo, hi = g * cpg, (g + 1) * cpg
        yg = acc[lo:hi, :]
        mean = jnp.sum(yg * mask) * inv_cnt
        d = (yg - mean) * mask
        var = jnp.sum(d * d) * inv_cnt
        rstd = jax.lax.rsqrt(var + eps)
        a_aff = gam_ref[lo:hi, :] * rstd           # GroupNorm folded into scale + shift
        b_aff = bet_ref[lo:hi, :] - mean * a_aff
        yn = yg * a_aff + b_aff
        yact = jnp.where(yn >= 0.0, yn, alpha * yn) * mask
        o_ref[0, lo:hi, wp + 1:wp + 1 + L] = yact.astype(o_ref.dtype)

    # pass conv2's skip operand through so stage 2 reads one fused (y | skip) buffer.
    o_ref[0, cmid:, :] = skip_ref[0]


def _stage2_kernel(x_ref, w_ref, b_ref, gam_ref, bet_ref, alpha_ref, o_ref, cmp_ref,
                   *, h, w, wp, groups, eps):
    """Parity-decomposed stride-2 ConvTranspose(3x3, pad=1, out_pad=1) + GroupNorm + PReLU.

    x_ref:   (1, 2*Cin, Fp) bf16 -- stage-1 output (activation | skip), padded-flat layout
    w_ref:   (9, Cout, 2*Cin) bf16, taps ordered per _S2_TAPS
    o_ref:   (1, Cout, 4*h*w) f32 -- plane-major compact output (lane-dense)
    cmp_ref: (Cout, 4*h*w) f32 VMEM scratch used to compact the padded rows.
    """
    cout = w_ref.shape[1]
    L = h * wp
    hw = h * w

    x = x_ref[0]                                   # (2*Cin, Fp) bf16
    accs = [jnp.zeros((cout, L), jnp.float32) for _ in range(4)]
    for k, (plane, dr, dc, _, _) in enumerate(_S2_TAPS):
        s = (1 + dr) * wp + (1 + dc)
        accs[plane] = accs[plane] + jnp.dot(w_ref[k], x[:, s:s + L],
                                            preferred_element_type=jnp.float32)

    bias = b_ref[...]                              # (Cout, 1)
    # Compact: drop the 2 pad columns of every image row -> dense plane-major scratch.
    for plane in range(4):
        acc_p = accs[plane] + bias
        for r in range(h):
            cmp_ref[:, plane * hw + r * w:plane * hw + (r + 1) * w] = \
                acc_p[:, r * wp:r * wp + w]

    alpha = alpha_ref[0, 0]
    cpg = cout // groups
    inv_cnt = 1.0 / float(cpg * 4 * hw)            # stats over the full 2H x 2W output

    for g in range(groups):
        lo, hi = g * cpg, (g + 1) * cpg
        yg = cmp_ref[lo:hi, :]                     # (cpg, 4*hw) f32, all columns valid
        mean = jnp.sum(yg) * inv_cnt
        d = yg - mean
        var = jnp.sum(d * d) * inv_cnt
        rstd = jax.lax.rsqrt(var + eps)
        a_aff = gam_ref[lo:hi, :] * rstd
        b_aff = bet_ref[lo:hi, :] - mean * a_aff
        yn = yg * a_aff + b_aff
        o_ref[0, lo:hi, :] = jnp.where(yn >= 0.0, yn, alpha * yn).astype(o_ref.dtype)


# =============================================================================== wrappers
def _pad_flatten(x, f_pad):
    """Zero-pad the image border by 1, flatten spatial onto the lane axis, pad to f_pad."""
    n, c, h, w = x.shape
    hp, wp = h + 2, w + 2
    xp = jnp.pad(x, ((0, 0), (0, 0), (1, 1), (1, 1)))
    flat = xp.reshape(n, c, hp * wp)
    return jnp.pad(flat, ((0, 0), (0, 0), (0, f_pad - hp * wp)))


def _tap_weights_s1(w_t):
    """ConvTranspose (Cin2, Cmid, 3, 3) -> standard-conv weights, tap-major (9, Cmid, Cin2)."""
    w_c = jnp.flip(w_t, axis=(2, 3)).transpose(1, 0, 2, 3)     # (Cmid, Cin2, 3, 3)
    cmid, cin2 = w_c.shape[0], w_c.shape[1]
    return w_c.transpose(2, 3, 0, 1).reshape(9, cmid, cin2)


def _tap_weights_s2(w_t):
    """ConvTranspose (Cin2, Cout, 3, 3) -> parity-decomposed taps (9, Cout, Cin2)."""
    return jnp.stack([w_t[:, :, kh, kw].T for (_, _, _, kh, kw) in _S2_TAPS], axis=0)


def _stage1_call(x1, s2, w1, bias, gamma, beta, alpha, mask, *, groups, h, w):
    n, c, fp = x1.shape
    cin_skip = s2.shape[1]
    cmid = w1.shape[1]
    wp = w + 2
    L = h * wp
    kern = functools.partial(_stage1_kernel, h=h, w=w, wp=wp, groups=groups, eps=_EPS)
    return pl.pallas_call(
        kern,
        out_shape=jax.ShapeDtypeStruct((n, cmid + cin_skip, fp), jnp.bfloat16),
        grid_spec=pltpu.PrefetchScalarGridSpec(
            num_scalar_prefetch=0,
            grid=(n,),
            in_specs=[
                pl.BlockSpec((1, c, fp), lambda i: (i, 0, 0)),
                pl.BlockSpec((1, cin_skip, fp), lambda i: (i, 0, 0)),
                pl.BlockSpec((9, cmid, c), lambda i: (0, 0, 0)),
                pl.BlockSpec((cmid, 1), lambda i: (0, 0)),
                pl.BlockSpec((cmid, 1), lambda i: (0, 0)),
                pl.BlockSpec((cmid, 1), lambda i: (0, 0)),
                pl.BlockSpec(memory_space=pltpu.MemorySpace.SMEM),
                pl.BlockSpec((1, L), lambda i: (0, 0)),
            ],
            out_specs=pl.BlockSpec((1, cmid + cin_skip, fp), lambda i: (i, 0, 0)),
        ),
        compiler_params=pltpu.CompilerParams(dimension_semantics=("parallel",)),
    )(x1, s2, w1,
      bias.reshape(cmid, 1).astype(jnp.float32),
      gamma.reshape(cmid, 1).astype(jnp.float32),
      beta.reshape(cmid, 1).astype(jnp.float32),
      jnp.asarray(alpha, jnp.float32).reshape(1, 1),
      mask)


def _stage2_call(xcat, w2, bias, gamma, beta, alpha, *, groups, h, w):
    n, c, fp = xcat.shape
    cout = w2.shape[1]
    wp = w + 2
    hw = h * w
    kern = functools.partial(_stage2_kernel, h=h, w=w, wp=wp, groups=groups, eps=_EPS)
    return pl.pallas_call(
        kern,
        out_shape=jax.ShapeDtypeStruct((n, cout, 4 * hw), jnp.float32),
        grid_spec=pltpu.PrefetchScalarGridSpec(
            num_scalar_prefetch=0,
            grid=(n,),
            in_specs=[
                pl.BlockSpec((1, c, fp), lambda i: (i, 0, 0)),
                pl.BlockSpec((9, cout, c), lambda i: (0, 0, 0)),
                pl.BlockSpec((cout, 1), lambda i: (0, 0)),
                pl.BlockSpec((cout, 1), lambda i: (0, 0)),
                pl.BlockSpec((cout, 1), lambda i: (0, 0)),
                pl.BlockSpec(memory_space=pltpu.MemorySpace.SMEM),
            ],
            out_specs=pl.BlockSpec((1, cout, 4 * hw), lambda i: (i, 0, 0)),
            scratch_shapes=[pltpu.VMEM((cout, 4 * hw), jnp.float32)],
        ),
        compiler_params=pltpu.CompilerParams(dimension_semantics=("parallel",)),
    )(xcat, w2,
      bias.reshape(cout, 1).astype(jnp.float32),
      gamma.reshape(cout, 1).astype(jnp.float32),
      beta.reshape(cout, 1).astype(jnp.float32),
      jnp.asarray(alpha, jnp.float32).reshape(1, 1))


def dec_double_conv_forward(x, skip_connections, p):
    """Pallas forward of DecDoubleConv (skip_connections popped from the end)."""
    sk = list(skip_connections)
    skip1 = sk.pop()            # consumed by conv1
    skip2 = sk.pop()            # consumed by conv2

    n, cin, h, w = x.shape
    hp, wp = h + 2, w + 2
    fp = _round_up(hp * wp + 2, 128)        # lane-dense flat length
    cout = p['w2'].shape[1]

    # Stage-1 matmul input: concat merged on the contraction dim, padded-flat, bf16.
    x1 = _pad_flatten(jnp.concatenate([x, skip1], axis=1), fp).astype(jnp.bfloat16)
    # Conv2's skip operand, laid out once; stage 1 passes it through so the two stages are
    # fully fused through HBM (no XLA repack in between).
    s2 = _pad_flatten(skip2, fp).astype(jnp.bfloat16)

    w1 = _tap_weights_s1(p['w1']).astype(jnp.bfloat16)
    w2 = _tap_weights_s2(p['w2']).astype(jnp.bfloat16)

    L = h * wp
    mask = (jnp.arange(L) % wp < w).astype(jnp.float32).reshape(1, L)

    ycat = _stage1_call(x1, s2, w1, p['b1'], p['g1'], p['bt1'], p['a1'], mask,
                        groups=p['groups1'], h=h, w=w)
    out_flat = _stage2_call(ycat, w2, p['b2'], p['g2'], p['bt2'], p['a2'],
                            groups=p['groups2'], h=h, w=w)

    # Final 2x2 parity interleave (one small XLA pass on the final output only).
    out = out_flat.reshape(n, cout, 2, 2, h, w).transpose(0, 1, 4, 2, 5, 3)
    return out.reshape(n, cout, 2 * h, 2 * w)


# =============================================================================== reference
def _ref_conv_transpose2d(x, w_t, bias, stride, padding, output_padding):
    n, cin, h, w = x.shape
    _, cout, kh_, kw_ = w_t.shape
    ho = (h - 1) * stride - 2 * padding + kh_ + output_padding
    wo = (w - 1) * stride - 2 * padding + kw_ + output_padding
    out = jnp.zeros((n, cout, ho, wo), jnp.float32)
    for kh in range(kh_):
        for kw in range(kw_):
            t = jnp.einsum('nchw,co->nohw', x, w_t[:, :, kh, kw],
                           precision=jax.lax.Precision.HIGHEST)
            rows = jnp.arange(h) * stride - padding + kh
            cols = jnp.arange(w) * stride - padding + kw
            rmask = ((rows >= 0) & (rows < ho)).astype(t.dtype)
            cmask = ((cols >= 0) & (cols < wo)).astype(t.dtype)
            t = t * rmask[None, None, :, None] * cmask[None, None, None, :]
            r = jnp.clip(rows, 0, ho - 1)
            c = jnp.clip(cols, 0, wo - 1)
            out = out.at[:, :, r[:, None], c[None, :]].add(t)
    return out + bias[None, :, None, None]


def _ref_group_norm(x, groups, gamma, beta, eps=_EPS):
    n, c, h, w = x.shape
    xg = x.reshape(n, groups, c // groups, h, w)
    mean = xg.mean(axis=(2, 3, 4), keepdims=True)
    var = ((xg - mean) ** 2).mean(axis=(2, 3, 4), keepdims=True)
    xn = ((xg - mean) / jnp.sqrt(var + eps)).reshape(n, c, h, w)
    return xn * gamma[None, :, None, None] + beta[None, :, None, None]


def _ref_prelu(x, a):
    return jnp.where(x >= 0, x, a * x)


def _ref_dec_double_conv(x, skip_connections, p):
    sk = list(skip_connections)
    y = _ref_conv_transpose2d(jnp.concatenate([x, sk.pop()], axis=1),
                              p['w1'], p['b1'], 1, 1, 0)
    y = _ref_prelu(_ref_group_norm(y, p['groups1'], p['g1'], p['bt1']), p['a1'])
    y2 = _ref_conv_transpose2d(jnp.concatenate([y, sk.pop()], axis=1),
                               p['w2'], p['b2'], 2, 1, 1)
    return _ref_prelu(_ref_group_norm(y2, p['groups2'], p['g2'], p['bt2']), p['a2'])


# =============================================================================== demo
if __name__ == "__main__":
    key = jax.random.PRNGKey(0)
    ks = jax.random.split(key, 11)

    N = 2
    CIN = 32            # in_channels
    COUT = 32           # out_channels
    CPG = 16            # channels_per_group
    H = W = 8

    x = jax.random.normal(ks[0], (N, CIN, H, W), jnp.float32)
    skip_early = jax.random.normal(ks[1], (N, CIN, H, W), jnp.float32)  # used by conv2
    skip_late = jax.random.normal(ks[2], (N, CIN, H, W), jnp.float32)   # used by conv1
    skips = [skip_early, skip_late]

    wscale = 1.0 / (2 * CIN * 9) ** 0.5
    params = dict(
        w1=jax.random.normal(ks[3], (2 * CIN, CIN, 3, 3), jnp.float32) * wscale,
        b1=0.1 * jax.random.normal(ks[4], (CIN,), jnp.float32),
        g1=1.0 + 0.1 * jax.random.normal(ks[5], (CIN,), jnp.float32),
        bt1=0.1 * jax.random.normal(ks[6], (CIN,), jnp.float32),
        a1=jnp.float32(0.25),
        groups1=CIN // CPG,
        w2=jax.random.normal(ks[7], (2 * CIN, COUT, 3, 3), jnp.float32) * wscale,
        b2=0.1 * jax.random.normal(ks[8], (COUT,), jnp.float32),
        g2=1.0 + 0.1 * jax.random.normal(ks[9], (COUT,), jnp.float32),
        bt2=0.1 * jax.random.normal(ks[10], (COUT,), jnp.float32),
        a2=jnp.float32(0.25),
        groups2=COUT // CPG,
    )

    out = dec_double_conv_forward(x, skips, params)
    out = jax.block_until_ready(out)

    ref = _ref_dec_double_conv(x, [skip_early, skip_late], params)
    assert out.shape == (N, COUT, 2 * H, 2 * W), out.shape
    # Tolerance sized for bf16 MXU operands with f32 accumulation through two conv stages.
    max_err = float(jnp.max(jnp.abs(out - ref)))
    assert jnp.allclose(out, ref, atol=3e-2, rtol=3e-2), max_err

    print("KERNEL_OK")
</pallas_src>

<mosaic_0001>
module attributes {stable_mosaic.version = 11 : i64} {
  func.func @_stage1_kernel(%arg0: i32, %arg1: memref<1x64x128xbf16, #tpu.memory_space<vmem>>, %arg2: memref<1x32x128xbf16, #tpu.memory_space<vmem>>, %arg3: memref<9x32x64xbf16, #tpu.memory_space<vmem>>, %arg4: memref<32x1xf32, #tpu.memory_space<vmem>>, %arg5: memref<32x1xf32, #tpu.memory_space<vmem>>, %arg6: memref<32x1xf32, #tpu.memory_space<vmem>>, %arg7: memref<1x1xf32, #tpu.memory_space<smem>>, %arg8: memref<1x80xf32, #tpu.memory_space<vmem>>, %arg9: memref<1x64x128xbf16, #tpu.memory_space<vmem>>) attributes {dimension_semantics = [#tpu.dimension_semantics<parallel>], iteration_bounds = array<i64: 2>, scalar_prefetch = 0 : i64, scratch_operands = 0 : i64, tpu.core_type = #tpu.core_type<tc>, window_params = [{transform_indices = @transform_0, window_bounds = array<i64: 1, 64, 128>}, {transform_indices = @transform_1, window_bounds = array<i64: 1, 32, 128>}, {pipeline_mode = #tpu.pipeline_mode<synchronous>, transform_indices = @transform_2, window_bounds = array<i64: 9, 32, 64>}, {pipeline_mode = #tpu.pipeline_mode<synchronous>, transform_indices = @transform_3, window_bounds = array<i64: 32, 1>}, {pipeline_mode = #tpu.pipeline_mode<synchronous>, transform_indices = @transform_4, window_bounds = array<i64: 32, 1>}, {pipeline_mode = #tpu.pipeline_mode<synchronous>, transform_indices = @transform_5, window_bounds = array<i64: 32, 1>}, {transform_indices = @transform_6, window_bounds = array<i64: 1, 1>}, {pipeline_mode = #tpu.pipeline_mode<synchronous>, transform_indices = @transform_7, window_bounds = array<i64: 1, 80>}, {transform_indices = @transform_8, window_bounds = array<i64: 1, 64, 128>}]} {
    %c0 = arith.constant 0 : index
    %c0_0 = arith.constant 0 : index
    %c0_1 = arith.constant 0 : index
    %0 = vector.load %arg1[%c0, %c0_0, %c0_1] : memref<1x64x128xbf16, #tpu.memory_space<vmem>>, vector<1x64x128xbf16>
    %1 = vector.shape_cast %0 : vector<1x64x128xbf16> to vector<64x128xbf16>
    %cst = arith.constant 0.000000e+00 : f32
    %2 = vector.broadcast %cst : f32 to vector<32x80xf32>
    %c0_2 = arith.constant 0 : index
    %c0_3 = arith.constant 0 : index
    %c0_4 = arith.constant 0 : index
    %3 = vector.load %arg3[%c0_2, %c0_3, %c0_4] : memref<9x32x64xbf16, #tpu.memory_space<vmem>>, vector<1x32x64xbf16>
    %4 = vector.shape_cast %3 : vector<1x32x64xbf16> to vector<32x64xbf16>
    %5 = vector.extract_strided_slice %1 {offsets = [0, 0], sizes = [64, 80], strides = [1, 1]} : vector<64x128xbf16> to vector<64x80xbf16>
    %cst_5 = arith.constant dense<0.000000e+00> : vector<32x80xf32>
    %6 = tpu.matmul %4, %5, %cst_5 {dimension_numbers = #tpu.dot_dimension_numbers<[1], [0], [0], [1], [0, 0, 1, 1], [], []>} : vector<32x64xbf16>, vector<64x80xbf16>, vector<32x80xf32> -> vector<32x80xf32>
    %7 = arith.addf %2, %6 : vector<32x80xf32>
    %c1 = arith.constant 1 : index
    %c0_6 = arith.constant 0 : index
    %c0_7 = arith.constant 0 : index
    %8 = vector.load %arg3[%c1, %c0_6, %c0_7] : memref<9x32x64xbf16, #tpu.memory_space<vmem>>, vector<1x32x64xbf16>
    %9 = vector.shape_cast %8 : vector<1x32x64xbf16> to vector<32x64xbf16>
    %10 = vector.extract_strided_slice %1 {offsets = [0, 1], sizes = [64, 80], strides = [1, 1]} : vector<64x128xbf16> to vector<64x80xbf16>
    %cst_8 = arith.constant dense<0.000000e+00> : vector<32x80xf32>
    %11 = tpu.matmul %9, %10, %cst_8 {dimension_numbers = #tpu.dot_dimension_numbers<[1], [0], [0], [1], [0, 0, 1, 1], [], []>} : vector<32x64xbf16>, vector<64x80xbf16>, vector<32x80xf32> -> vector<32x80xf32>
    %12 = arith.addf %7, %11 : vector<32x80xf32>
    %c2 = arith.constant 2 : index
    %c0_9 = arith.constant 0 : index
    %c0_10 = arith.constant 0 : index
    %13 = vector.load %arg3[%c2, %c0_9, %c0_10] : memref<9x32x64xbf16, #tpu.memory_space<vmem>>, vector<1x32x64xbf16>
    %14 = vector.shape_cast %13 : vector<1x32x64xbf16> to vector<32x64xbf16>
    %15 = vector.extract_strided_slice %1 {offsets = [0, 2], sizes = [64, 80], strides = [1, 1]} : vector<64x128xbf16> to vector<64x80xbf16>
    %cst_11 = arith.constant dense<0.000000e+00> : vector<32x80xf32>
    %16 = tpu.matmul %14, %15, %cst_11 {dimension_numbers = #tpu.dot_dimension_numbers<[1], [0], [0], [1], [0, 0, 1, 1], [], []>} : vector<32x64xbf16>, vector<64x80xbf16>, vector<32x80xf32> -> vector<32x80xf32>
    %17 = arith.addf %12, %16 : vector<32x80xf32>
    %c3 = arith.constant 3 : index
    %c0_12 = arith.constant 0 : index
    %c0_13 = arith.constant 0 : index
    %18 = vector.load %arg3[%c3, %c0_12, %c0_13] : memref<9x32x64xbf16, #tpu.memory_space<vmem>>, vector<1x32x64xbf16>
    %19 = vector.shape_cast %18 : vector<1x32x64xbf16> to vector<32x64xbf16>
    %20 = vector.extract_strided_slice %1 {offsets = [0, 10], sizes = [64, 80], strides = [1, 1]} : vector<64x128xbf16> to vector<64x80xbf16>
    %cst_14 = arith.constant dense<0.000000e+00> : vector<32x80xf32>
    %21 = tpu.matmul %19, %20, %cst_14 {dimension_numbers = #tpu.dot_dimension_numbers<[1], [0], [0], [1], [0, 0, 1, 1], [], []>} : vector<32x64xbf16>, vector<64x80xbf16>, vector<32x80xf32> -> vector<32x80xf32>
    %22 = arith.addf %17, %21 : vector<32x80xf32>
    %c4 = arith.constant 4 : index
    %c0_15 = arith.constant 0 : index
    %c0_16 = arith.constant 0 : index
    %23 = vector.load %arg3[%c4, %c0_15, %c0_16] : memref<9x32x64xbf16, #tpu.memory_space<vmem>>, vector<1x32x64xbf16>
    %24 = vector.shape_cast %23 : vector<1x32x64xbf16> to vector<32x64xbf16>
    %25 = vector.extract_strided_slice %1 {offsets = [0, 11], sizes = [64, 80], strides = [1, 1]} : vector<64x128xbf16> to vector<64x80xbf16>
    %cst_17 = arith.constant dense<0.000000e+00> : vector<32x80xf32>
    %26 = tpu.matmul %24, %25, %cst_17 {dimension_numbers = #tpu.dot_dimension_numbers<[1], [0], [0], [1], [0, 0, 1, 1], [], []>} : vector<32x64xbf16>, vector<64x80xbf16>, vector<32x80xf32> -> vector<32x80xf32>
    %27 = arith.addf %22, %26 : vector<32x80xf32>
    %c5 = arith.constant 5 : index
    %c0_18 = arith.constant 0 : index
    %c0_19 = arith.constant 0 : index
    %28 = vector.load %arg3[%c5, %c0_18, %c0_19] : memref<9x32x64xbf16, #tpu.memory_space<vmem>>, vector<1x32x64xbf16>
    %29 = vector.shape_cast %28 : vector<1x32x64xbf16> to vector<32x64xbf16>
    %30 = vector.extract_strided_slice %1 {offsets = [0, 12], sizes = [64, 80], strides = [1, 1]} : vector<64x128xbf16> to vector<64x80xbf16>
    %cst_20 = arith.constant dense<0.000000e+00> : vector<32x80xf32>
    %31 = tpu.matmul %29, %30, %cst_20 {dimension_numbers = #tpu.dot_dimension_numbers<[1], [0], [0], [1], [0, 0, 1, 1], [], []>} : vector<32x64xbf16>, vector<64x80xbf16>, vector<32x80xf32> -> vector<32x80xf32>
    %32 = arith.addf %27, %31 : vector<32x80xf32>
    %c6 = arith.constant 6 : index
    %c0_21 = arith.constant 0 : index
    %c0_22 = arith.constant 0 : index
    %33 = vector.load %arg3[%c6, %c0_21, %c0_22] : memref<9x32x64xbf16, #tpu.memory_space<vmem>>, vector<1x32x64xbf16>
    %34 = vector.shape_cast %33 : vector<1x32x64xbf16> to vector<32x64xbf16>
    %35 = vector.extract_strided_slice %1 {offsets = [0, 20], sizes = [64, 80], strides = [1, 1]} : vector<64x128xbf16> to vector<64x80xbf16>
    %cst_23 = arith.constant dense<0.000000e+00> : vector<32x80xf32>
    %36 = tpu.matmul %34, %35, %cst_23 {dimension_numbers = #tpu.dot_dimension_numbers<[1], [0], [0], [1], [0, 0, 1, 1], [], []>} : vector<32x64xbf16>, vector<64x80xbf16>, vector<32x80xf32> -> vector<32x80xf32>
    %37 = arith.addf %32, %36 : vector<32x80xf32>
    %c7 = arith.constant 7 : index
    %c0_24 = arith.constant 0 : index
    %c0_25 = arith.constant 0 : index
    %38 = vector.load %arg3[%c7, %c0_24, %c0_25] : memref<9x32x64xbf16, #tpu.memory_space<vmem>>, vector<1x32x64xbf16>
    %39 = vector.shape_cast %38 : vector<1x32x64xbf16> to vector<32x64xbf16>
    %40 = vector.extract_strided_slice %1 {offsets = [0, 21], sizes = [64, 80], strides = [1, 1]} : vector<64x128xbf16> to vector<64x80xbf16>
    %cst_26 = arith.constant dense<0.000000e+00> : vector<32x80xf32>
    %41 = tpu.matmul %39, %40, %cst_26 {dimension_numbers = #tpu.dot_dimension_numbers<[1], [0], [0], [1], [0, 0, 1, 1], [], []>} : vector<32x64xbf16>, vector<64x80xbf16>, vector<32x80xf32> -> vector<32x80xf32>
    %42 = arith.addf %37, %41 : vector<32x80xf32>
    %c8 = arith.constant 8 : index
    %c0_27 = arith.constant 0 : index
    %c0_28 = arith.constant 0 : index
    %43 = vector.load %arg3[%c8, %c0_27, %c0_28] : memref<9x32x64xbf16, #tpu.memory_space<vmem>>, vector<1x32x64xbf16>
    %44 = vector.shape_cast %43 : vector<1x32x64xbf16> to vector<32x64xbf16>
    %45 = vector.extract_strided_slice %1 {offsets = [0, 22], sizes = [64, 80], strides = [1, 1]} : vector<64x128xbf16> to vector<64x80xbf16>
    %cst_29 = arith.constant dense<0.000000e+00> : vector<32x80xf32>
    %46 = tpu.matmul %44, %45, %cst_29 {dimension_numbers = #tpu.dot_dimension_numbers<[1], [0], [0], [1], [0, 0, 1, 1], [], []>} : vector<32x64xbf16>, vector<64x80xbf16>, vector<32x80xf32> -> vector<32x80xf32>
    %47 = arith.addf %42, %46 : vector<32x80xf32>
    %c0_30 = arith.constant 0 : index
    %c0_31 = arith.constant 0 : index
    %48 = vector.load %arg4[%c0_30, %c0_31] : memref<32x1xf32, #tpu.memory_space<vmem>>, vector<32x1xf32>
    %49 = vector.broadcast %48 : vector<32x1xf32> to vector<32x80xf32>
    %50 = arith.addf %47, %49 : vector<32x80xf32>
    %c0_32 = arith.constant 0 : index
    %c0_33 = arith.constant 0 : index
    %51 = vector.load %arg8[%c0_32, %c0_33] : memref<1x80xf32, #tpu.memory_space<vmem>>, vector<1x80xf32>
    %c0_34 = arith.constant 0 : index
    %c0_35 = arith.constant 0 : index
    %52 = memref.load %arg7[%c0_34, %c0_35] : memref<1x1xf32, #tpu.memory_space<smem>>
    %cst_36 = arith.constant 0.000000e+00 : bf16
    %53 = vector.broadcast %cst_36 : bf16 to vector<32x128xbf16>
    %c0_37 = arith.constant 0 : index
    %c0_38 = arith.constant 0 : index
    %c0_39 = arith.constant 0 : index
    %54 = vector.load %arg9[%c0_37, %c0_38, %c0_39] : memref<1x64x128xbf16, #tpu.memory_space<vmem>>, vector<1x32x128xbf16>
    %55 = vector.shape_cast %54 : vector<1x32x128xbf16> to vector<32x128xbf16>
    %56 = vector.shape_cast %53 : vector<32x128xbf16> to vector<1x32x128xbf16>
    tpu.vector_store %arg9[%c0_37, %c0_38, %c0_39], %56 {strides = array<i32>} : memref<1x64x128xbf16, #tpu.memory_space<vmem>>, vector<1x32x128xbf16>,
    %57 = vector.extract_strided_slice %50 {offsets = [0, 0], sizes = [16, 80], strides = [1, 1]} : vector<32x80xf32> to vector<16x80xf32>
    %58 = vector.broadcast %51 : vector<1x80xf32> to vector<16x80xf32>
    %59 = arith.mulf %57, %58 : vector<16x80xf32>
    %60 = vector.shape_cast %59 : vector<16x80xf32> to vector<1x16x80xf32>
    %cst_40 = arith.constant dense<0.000000e+00> : vector<1xf32>
    %61 = vector.multi_reduction <add>, %60, %cst_40 [1, 2] : vector<1x16x80xf32> to vector<1xf32>
    %62 = vector.shape_cast %61 : vector<1xf32> to vector<1x1x1xf32>
    %63 = vector.extract %62[0, 0, 0] : f32 from vector<1x1x1xf32>
    %cst_41 = arith.constant 9.765625E-4 : f32
    %64 = arith.mulf %63, %cst_41 : f32
    %65 = vector.broadcast %64 : f32 to vector<16x80xf32>
    %66 = arith.subf %57, %65 : vector<16x80xf32>
    %67 = vector.broadcast %51 : vector<1x80xf32> to vector<16x80xf32>
    %68 = arith.mulf %66, %67 : vector<16x80xf32>
    %69 = arith.mulf %68, %68 : vector<16x80xf32>
    %70 = vector.shape_cast %69 : vector<16x80xf32> to vector<1x16x80xf32>
    %cst_42 = arith.constant dense<0.000000e+00> : vector<1xf32>
    %71 = vector.multi_reduction <add>, %70, %cst_42 [1, 2] : vector<1x16x80xf32> to vector<1xf32>
    %72 = vector.shape_cast %71 : vector<1xf32> to vector<1x1x1xf32>
    %73 = vector.extract %72[0, 0, 0] : f32 from vector<1x1x1xf32>
    %cst_43 = arith.constant 9.765625E-4 : f32
    %74 = arith.mulf %73, %cst_43 : f32
    %cst_44 = arith.constant 9.99999974E-6 : f32
    %75 = arith.addf %74, %cst_44 : f32
    %76 = math.rsqrt %75 : f32
    %c0_45 = arith.constant 0 : index
    %c0_46 = arith.constant 0 : index
    %77 = vector.load %arg5[%c0_45, %c0_46] : memref<32x1xf32, #tpu.memory_space<vmem>>, vector<16x1xf32>
    %78 = vector.broadcast %76 : f32 to vector<16x1xf32>
    %79 = arith.mulf %77, %78 : vector<16x1xf32>
    %c0_47 = arith.constant 0 : index
    %c0_48 = arith.constant 0 : index
    %80 = vector.load %arg6[%c0_47, %c0_48] : memref<32x1xf32, #tpu.memory_space<vmem>>, vector<16x1xf32>
    %81 = vector.broadcast %64 : f32 to vector<16x1xf32>
    %82 = arith.mulf %81, %79 : vector<16x1xf32>
    %83 = arith.subf %80, %82 : vector<16x1xf32>
    %84 = vector.broadcast %79 : vector<16x1xf32> to vector<16x80xf32>
    %85 = arith.mulf %57, %84 : vector<16x80xf32>
    %86 = vector.broadcast %83 : vector<16x1xf32> to vector<16x80xf32>
    %87 = arith.addf %85, %86 : vector<16x80xf32>
    %cst_49 = arith.constant 0.000000e+00 : f32
    %88 = vector.broadcast %cst_49 : f32 to vector<16x80xf32>
    %89 = arith.cmpf oge, %87, %88 : vector<16x80xf32>
    %90 = vector.broadcast %52 : f32 to vector<16x80xf32>
    %91 = arith.mulf %90, %87 : vector<16x80xf32>
    %92 = arith.select %89, %87, %91 : vector<16x80xi1>, vector<16x80xf32>
    %93 = vector.broadcast %51 : vector<1x80xf32> to vector<16x80xf32>
    %94 = arith.mulf %92, %93 : vector<16x80xf32>
    %95 = arith.truncf %94 : vector<16x80xf32> to vector<16x80xbf16>
    %c0_50 = arith.constant 0 : index
    %c0_51 = arith.constant 0 : index
    %c11 = arith.constant 11 : index
    %96 = vector.load %arg9[%c0_50, %c0_51, %c11] : memref<1x64x128xbf16, #tpu.memory_space<vmem>>, vector<1x16x80xbf16>
    %97 = vector.shape_cast %96 : vector<1x16x80xbf16> to vector<16x80xbf16>
    %98 = vector.shape_cast %95 : vector<16x80xbf16> to vector<1x16x80xbf16>
    tpu.vector_store %arg9[%c0_50, %c0_51, %c11], %98 {strides = array<i32>} : memref<1x64x128xbf16, #tpu.memory_space<vmem>>, vector<1x16x80xbf16>,
    %99 = vector.extract_strided_slice %50 {offsets = [16, 0], sizes = [16, 80], strides = [1, 1]} : vector<32x80xf32> to vector<16x80xf32>
    %100 = vector.broadcast %51 : vector<1x80xf32> to vector<16x80xf32>
    %101 = arith.mulf %99, %100 : vector<16x80xf32>
    %102 = vector.shape_cast %101 : vector<16x80xf32> to vector<1x16x80xf32>
    %cst_52 = arith.constant dense<0.000000e+00> : vector<1xf32>
    %103 = vector.multi_reduction <add>, %102, %cst_52 [1, 2] : vector<1x16x80xf32> to vector<1xf32>
    %104 = vector.shape_cast %103 : vector<1xf32> to vector<1x1x1xf32>
    %105 = vector.extract %104[0, 0, 0] : f32 from vector<1x1x1xf32>
    %cst_53 = arith.constant 9.765625E-4 : f32
    %106 = arith.mulf %105, %cst_53 : f32
    %107 = vector.broadcast %106 : f32 to vector<16x80xf32>
    %108 = arith.subf %99, %107 : vector<16x80xf32>
    %109 = vector.broadcast %51 : vector<1x80xf32> to vector<16x80xf32>
    %110 = arith.mulf %108, %109 : vector<16x80xf32>
    %111 = arith.mulf %110, %110 : vector<16x80xf32>
    %112 = vector.shape_cast %111 : vector<16x80xf32> to vector<1x16x80xf32>
    %cst_54 = arith.constant dense<0.000000e+00> : vector<1xf32>
    %113 = vector.multi_reduction <add>, %112, %cst_54 [1, 2] : vector<1x16x80xf32> to vector<1xf32>
    %114 = vector.shape_cast %113 : vector<1xf32> to vector<1x1x1xf32>
    %115 = vector.extract %114[0, 0, 0] : f32 from vector<1x1x1xf32>
    %cst_55 = arith.constant 9.765625E-4 : f32
    %116 = arith.mulf %115, %cst_55 : f32
    %cst_56 = arith.constant 9.99999974E-6 : f32
    %117 = arith.addf %116, %cst_56 : f32
    %118 = math.rsqrt %117 : f32
    %c16 = arith.constant 16 : index
    %c0_57 = arith.constant 0 : index
    %119 = vector.load %arg5[%c16, %c0_57] : memref<32x1xf32, #tpu.memory_space<vmem>>, vector<16x1xf32>
    %120 = vector.broadcast %118 : f32 to vector<16x1xf32>
    %121 = arith.mulf %119, %120 : vector<16x1xf32>
    %c16_58 = arith.constant 16 : index
    %c0_59 = arith.constant 0 : index
    %122 = vector.load %arg6[%c16_58, %c0_59] : memref<32x1xf32, #tpu.memory_space<vmem>>, vector<16x1xf32>
    %123 = vector.broadcast %106 : f32 to vector<16x1xf32>
    %124 = arith.mulf %123, %121 : vector<16x1xf32>
    %125 = arith.subf %122, %124 : vector<16x1xf32>
    %126 = vector.broadcast %121 : vector<16x1xf32> to vector<16x80xf32>
    %127 = arith.mulf %99, %126 : vector<16x80xf32>
    %128 = vector.broadcast %125 : vector<16x1xf32> to vector<16x80xf32>
    %129 = arith.addf %127, %128 : vector<16x80xf32>
    %cst_60 = arith.constant 0.000000e+00 : f32
    %130 = vector.broadcast %cst_60 : f32 to vector<16x80xf32>
    %131 = arith.cmpf oge, %129, %130 : vector<16x80xf32>
    %132 = vector.broadcast %52 : f32 to vector<16x80xf32>
    %133 = arith.mulf %132, %129 : vector<16x80xf32>
    %134 = arith.select %131, %129, %133 : vector<16x80xi1>, vector<16x80xf32>
    %135 = vector.broadcast %51 : vector<1x80xf32> to vector<16x80xf32>
    %136 = arith.mulf %134, %135 : vector<16x80xf32>
    %137 = arith.truncf %136 : vector<16x80xf32> to vector<16x80xbf16>
    %c0_61 = arith.constant 0 : index
    %c16_62 = arith.constant 16 : index
    %c11_63 = arith.constant 11 : index
    %138 = vector.load %arg9[%c0_61, %c16_62, %c11_63] : memref<1x64x128xbf16, #tpu.memory_space<vmem>>, vector<1x16x80xbf16>
    %139 = vector.shape_cast %138 : vector<1x16x80xbf16> to vector<16x80xbf16>
    %140 = vector.shape_cast %137 : vector<16x80xbf16> to vector<1x16x80xbf16>
    tpu.vector_store %arg9[%c0_61, %c16_62, %c11_63], %140 {strides = array<i32>} : memref<1x64x128xbf16, #tpu.memory_space<vmem>>, vector<1x16x80xbf16>,
    %c0_64 = arith.constant 0 : index
    %c0_65 = arith.constant 0 : index
    %c0_66 = arith.constant 0 : index
    %141 = vector.load %arg2[%c0_64, %c0_65, %c0_66] : memref<1x32x128xbf16, #tpu.memory_space<vmem>>, vector<1x32x128xbf16>
    %142 = vector.shape_cast %141 : vector<1x32x128xbf16> to vector<32x128xbf16>
    %c0_67 = arith.constant 0 : index
    %c32 = arith.constant 32 : index
    %c0_68 = arith.constant 0 : index
    %143 = vector.load %arg9[%c0_67, %c32, %c0_68] : memref<1x64x128xbf16, #tpu.memory_space<vmem>>, vector<1x32x128xbf16>
    %144 = vector.shape_cast %143 : vector<1x32x128xbf16> to vector<32x128xbf16>
    %145 = vector.shape_cast %142 : vector<32x128xbf16> to vector<1x32x128xbf16>
    tpu.vector_store %arg9[%c0_67, %c32, %c0_68], %145 {strides = array<i32>} : memref<1x64x128xbf16, #tpu.memory_space<vmem>>, vector<1x32x128xbf16>,
    return
  }
  func.func @transform_0(%arg0: i32) -> (i32, i32, i32) {
    %c0_i32 = arith.constant 0 : i32
    %c0_i32_0 = arith.constant 0 : i32
    %c0_i32_1 = arith.constant 0 : i32
    return %arg0, %c0_i32, %c0_i32_0 : i32, i32, i32
  }
  func.func @transform_1(%arg0: i32) -> (i32, i32, i32) {
    %c0_i32 = arith.constant 0 : i32
    %c0_i32_0 = arith.constant 0 : i32
    %c0_i32_1 = arith.constant 0 : i32
    return %arg0, %c0_i32, %c0_i32_0 : i32, i32, i32
  }
  func.func @transform_2(%arg0: i32) -> (i32, i32, i32) {
    %c0_i32 = arith.constant 0 : i32
    %c0_i32_0 = arith.constant 0 : i32
    %c0_i32_1 = arith.constant 0 : i32
    %c0_i32_2 = arith.constant 0 : i32
    return %c0_i32, %c0_i32_0, %c0_i32_1 : i32, i32, i32
  }
  func.func @transform_3(%arg0: i32) -> (i32, i32) {
    %c0_i32 = arith.constant 0 : i32
    %c0_i32_0 = arith.constant 0 : i32
    %c0_i32_1 = arith.constant 0 : i32
    return %c0_i32, %c0_i32_0 : i32, i32
  }
  func.func @transform_4(%arg0: i32) -> (i32, i32) {
    %c0_i32 = arith.constant 0 : i32
    %c0_i32_0 = arith.constant 0 : i32
    %c0_i32_1 = arith.constant 0 : i32
    return %c0_i32, %c0_i32_0 : i32, i32
  }
  func.func @transform_5(%arg0: i32) -> (i32, i32) {
    %c0_i32 = arith.constant 0 : i32
    %c0_i32_0 = arith.constant 0 : i32
    %c0_i32_1 = arith.constant 0 : i32
    return %c0_i32, %c0_i32_0 : i32, i32
  }
  func.func @transform_6(%arg0: i32) -> (i32, i32) {
    %c0_i32 = arith.constant 0 : i32
    %c0_i32_0 = arith.constant 0 : i32
    %c0_i32_1 = arith.constant 0 : i32
    return %c0_i32, %c0_i32_0 : i32, i32
  }
  func.func @transform_7(%arg0: i32) -> (i32, i32) {
    %c0_i32 = arith.constant 0 : i32
    %c0_i32_0 = arith.constant 0 : i32
    %c0_i32_1 = arith.constant 0 : i32
    return %c0_i32, %c0_i32_0 : i32, i32
  }
  func.func @transform_8(%arg0: i32) -> (i32, i32, i32) {
    %c0_i32 = arith.constant 0 : i32
    %c0_i32_0 = arith.constant 0 : i32
    %c0_i32_1 = arith.constant 0 : i32
    return %arg0, %c0_i32, %c0_i32_0 : i32, i32, i32
  }
}

</mosaic_0001>

<bundles_post_ra>
// kernel: tpu_custom_call.1
= control target key start
LH: loop header
LB: loop body
LE: loop exit
PB: predicated region body
PF: predicated region fallthrough
CT: control target
= control target key end

     0   :  { %s2319_s0 = inlined_call_operand.vmem [shape: bf16[2,64,128], index: 0, kind: input, shape index: {}]   ;;  %s2320_s1 = inlined_call_operand.vmem [shape: bf16[2,32,128], index: 1, kind: input, shape index: {}]   ;;  %s2321_s2 = inlined_call_operand.hbm [shape: bf16[9,32,64], index: 2, kind: input, shape index: {}]   ;;  %s2322_s3 = inlined_call_operand.vmem [shape: f32[32,1], index: 3, kind: input, shape index: {}]   ;;  %s2323_s4 = inlined_call_operand.vmem [shape: f32[32,1], index: 4, kind: input, shape index: {}]   ;;  %s2324_s5 = inlined_call_operand.vmem [shape: f32[32,1], index: 5, kind: input, shape index: {}]   ;;  %s2325_s6 = inlined_call_operand.<no memory space> [shape: f32[1,1], index: 6, kind: input, shape index: {}]   ;;  %s2326_s7 = inlined_call_operand.vmem [shape: f32[1,80], index: 7, kind: input, shape index: {}]   ;;  %s2327_s8 = inlined_call_operand.hbm [shape: bf16[2,64,128], index: 8, kind: output, shape index: {}]  }
   0x1   :  { %13 = sst [smem:[#allocation2]] %s2325_s6 }
   0x2   :  { %14 = vsyncpa [#allocation4], 0 }
   0x3   :  { %15 = vsyncpa [#allocation5], 0 }
   0x4   :  { %17 = vsyncpa [#allocation5 + $0x1], 0  ;;  %s1996_s29 = smov 0   ;;  %s1998_s30 = smov 0  }
   0x5   :  { %s2000_s9 = smov 0   ;;  %s2002_s10 = smov 0  }
   0x6 LB: > { %s2017_s6 = sadd.s32 4294967295, %s1930_s10   ;;  %s1470_s11 = sadd.s32 4294967294, %s1930_s10   ;;  %s1930_s10 = sphi %s2002_s10, %s2343_s10   ;;  %s1926_s9 = sphi %s2000_s9, %s2342_s9   ;;  %s1922_s30 = sphi %s1998_s30, %s2341_s30   ;;  %s1918_s29 = sphi %s1996_s29, %s2340_s29  }
   0x7   : > { %s2021_s12 = sadd.s32 1, %s1930_s10   ;;  %s208_s13 = sadd.s32 1, %s1926_s9 }
   0x8   : > { %s205_s14 = ssub.s32 %s1930_s10, %s2021_s12  ;;  %p218_p0 = scmp.ne.s32.totalorder %s1926_s9, %s1922_s30 }
   0x9   : > { %p206_p1 = scmp.eq.s32.totalorder %s205_s14, 0  ;;  %p219_p2 = scmp.eq.s32.totalorder %s2017_s6, 1 }
   0xa   : > { %p224_p3 = scmp.ne.s32.totalorder %s1922_s30, %s1918_s29  ;;  %p225_p4 = scmp.eq.s32.totalorder %s1470_s11, 1 }
   0xb   : > { %s2032_s15 = scalar_select %p206_p1, %s1926_s9, %s208_s13  }
   0xc   : > { %p2034_p5 = por %p219_p2, %p218_p0  ;;  %p2038_p6 = por %p225_p4, %p224_p3 }
   0xd   : > { %p1471_p7 = scmp.ge.s32.totalorder %s1930_s10, 1  ;;  %p232_p8 = scmp.lt.s32.totalorder %s1930_s10, 3 }
   0xe   : > { %s2331_s16 = scalar_select %p2034_p5, 1, 0 }
   0xf   : > { %s2332_s17 = scalar_select %p2038_p6, 1, 0 }
  0x10   : > { %p2328_p9 = scmp.eq.s32.totalorder %s2017_s6, 0  ;;  %p2045_p10 = pnand %p1471_p7, %p232_p8 }
  0x11   : > { %s1932_s19 = smov [#allocation3]   ;;  %s1836_s24 = scalar_lea.hbm %s2321_s2, 2304 }
  0x12   : > { %s2333_s18 = scalar_select %p2045_p10, 1, 0 }
  0x13   : > { %s244_s20 = sshll.u32 %s1932_s19, 4  ;;  %p1750_p11 = pneg %p2045_p10  ;;  %s245_s20 = int_to_ptr.vmem [resolvable:$true] %s244_s20 }
  0x14   : > { %p1837_p13 = scmp.ne.s32.totalorder %s2321_s2, %s1836_s24  ;;  %p1843_p3 = scmp.lt.u32.totalorder %s1836_s24, %s2321_s2 }
  0x15   : > { %p2053_p12 = pnand %p2328_p9, %p1750_p11 }
  0x17   : > { %p1838_p0 = pneg %p2053_p12 }
  0x19   : > { %p1839_p1 = pnand %p1838_p0, %p1837_p13 }
  0x1b   : > { %p1840_p2 = pneg %p1839_p1 }
  0x1d   : > { %p1845_p4 = pnand %p1843_p3, %p1840_p2 }
  0x1f   : > { %1848 = shalt.err (!%p1845_p4)
}
  0x20   : > { %s1849_s11 = scalar_lea.vmem %s245_s20, 2304  ;;  %p1857_p9 = scmp.lt.s32.totalorder %s245_s20, %s245_s20 }
  0x21   : > { %p1850_p7 = scmp.ne.s32.totalorder %s245_s20, %s1849_s11  ;;  %p1858_p6 = scmp.lt.s32.totalorder %s1849_s11, %s1849_s11 }
  0x23   : > { %p1852_p8 = pnand %p1850_p7, %p1838_p0  ;;  %p1859_p5 = por %p1858_p6, %p1857_p9 }
  0x25   : > { %p1853_p11 = pneg %p1852_p8 }
  0x27   : > { %p1860_p10 = pnand %p1859_p5, %p1853_p11 }
  0x29   : > { %1863 = shalt.err (!%p1860_p10)
}
  0x2a   : > { %s1933_s13 = smov 64   ;;  %s1934_s14 = smov 4  }
  0x2b   : > { %1753 = dma.hbm_to_vmem [thread:$0]  (!%p2053_p12), %s2321_s2, 2304, %s245_s20, [#allocation4], %s1933_s13, %s1933_s13, %s1934_s14  }
  0x2c   : > { %p2335_p13 = scmp.ne.s32.totalorder %s2333_s18, 0 }
  0x2d   : > { %p2336_p1 = scmp.eq.s32.totalorder (!%p2335_p13), %s2017_s6, 0 }
  0x2e   : > { %291 = sbr.rel (%p2335_p13) target bundleno = 1523 (0x5f3), region = 52 }
  0x35   : > { %1909 = dma.done.wait (%p2336_p1), [#allocation4], 2304   ;;  %p2337_p0 = pmov %p2336_p1 }
  0x36   : > { %p330_p5 = scmp.lt.s32.totalorder %s2017_s6, 1  ;;  %s1935_s18 = smov 117   ;;  %vm400_vm0 = vcmask 523264   ;;  %v1814_v4 = vld [vmem:[#allocation3 + $0x40] sm:$0xff]   ;;  %v1816_v5 = vld [vmem:[#allocation3 + $0x10] sm:$0xff]   ;;  %v1943_v7 = vmov 0  }
  0x37   : > { %1911 = vsyncadd (%p2337_p0), [#allocation4], 4294964992  ;;  %1648 = vmatprep.mubr.msk.bf16.mxu0 %vm400_vm0, %v1814_v4  ;;  %s1936_s26 = smov 127   ;;  %s1937_s27 = smov 116   ;;  %1600 = vmatprep.mubr.msk.bf16.mxu1 %vm400_vm0, %v1816_v5  ;;  %v1127_v6 = vld [vmem:[%s2322_s3] sm:$0xff]  ;;  %v1128_v8 = vld [vmem:[%s2322_s3 + $0x8] sm:$0xff] }
  0x38   : > { %s2081_s23 = scalar_select %p330_p5, %s2017_s6, 1  ;;  %1808 = vset.pattern.permute.xlu0 %v1943_v7  ;;  %1809 = vset.pattern.permute.xlu1 %v1943_v7  ;;  %v1129_v9 = vld [vmem:[%s2322_s3 + $0x10] sm:$0xff]  ;;  %v1130_v10 = vld [vmem:[%s2322_s3 + $0x18] sm:$0xff]  ;;  %v1815_v18 = vld [vmem:[#allocation3 + $0x48] sm:$0xff]   ;;  %vm1169_vm1 = vcmask 654336   ;;  %vm1263_vm4 = vcmask 740440  }
  0x39   : > { %s1938_s28 = smov 108   ;;  %s1939_s11 = smov 126   ;;  %v1818_v20 = vld [vmem:[#allocation3 + $0x50] sm:$0xff]   ;;  %v1817_v24 = vld [vmem:[#allocation3 + $0x18] sm:$0xff]   ;;  %v1820_v27 = vld [vmem:[#allocation3] sm:$0xff]  }
  0x3a   : > { %s1531_s21 = sshll.u32 %s2081_s23, 5  ;;  %s1940_s13 = smov 107   ;;  %v1819_v30 = vld [vmem:[#allocation3 + $0x58] sm:$0xff]   ;;  %v1822_v33 = vld [vmem:[#allocation3 + $0x60] sm:$0xff]   ;;  %v1821_v36 = vld [vmem:[#allocation3 + $0x8] sm:$0xff]  }
  0x3b   : > { %s334_s20 = scalar_lea.vmem %s2319_s0, %s1531_s21  ;;  %s1941_s14 = smov 118   ;;  %v1824_v39 = vld [vmem:[#allocation3 + $0x20] sm:$0xff]   ;;  %v1823_v42 = vld [vmem:[#allocation3 + $0x68] sm:$0xff]   ;;  %v1826_v45 = vld [vmem:[#allocation3 + $0x70] sm:$0xff]  }
  0x3c   : > { %v2087_v0 = vld [vmem:[%s334_s20] sm:$0xff]   ;;  %v2089_v1 = vld [vmem:[%s334_s20 + $0x8] sm:$0xff]   ;;  %v2092_v2 = vld [vmem:[%s334_s20 + $0x10] sm:$0xff]   ;;  %s1942_s19 = smov 106   ;;  %s1156_s25 = sld [smem:[#allocation2]] }
  0x3d   : > { %712 = vrot.lane.b32.xlu0 %v2087_v0, %s1935_s18  ;;  %v2094_v3 = vld [vmem:[%s334_s20 + $0x18] sm:$0xff]   ;;  %716 = vrot.lane.b32.xlu1 %v2092_v2, %s1935_s18  ;;  %v1825_v47 = vld [vmem:[#allocation3 + $0x28] sm:$0xff]   ;;  %v1828_v49 = vld [vmem:[#allocation3 + $0x30] sm:$0xff]   ;;  %s1532_s20 = sshll.u32 %s2081_s23, 4  ;;  %s1537_s23 = sshll.u32 %s2017_s6, 9 }
  0x3e   : > { %v1827_v52 = vld [vmem:[#allocation3 + $0x78] sm:$0xff]   ;;  %v1830_v54 = vld [vmem:[#allocation3 + $0x80] sm:$0xff]   ;;  %v1831_v58 = vld [vmem:[#allocation3 + $0x88] sm:$0xff]   ;;  %p2338_p9 = scmp.ne.s32.totalorder %s2331_s16, 0 }
  0x3f   : > { %v1829_v56 = vld [vmem:[#allocation3 + $0x38] sm:$0xff]  }
  0x41   : > { %714 = vrot.lane.b32.xlu0 %v2089_v1, %s1935_s18  ;;  %718 = vrot.lane.b32.xlu1 %v2094_v3, %s1935_s18 }
  0x45   : > { %388 = vrot.lane.b32.xlu0 %v2087_v0, %s1936_s26  ;;  %798 = vrot.lane.b32.xlu1 %v2087_v0, %s1937_s27 }
  0x49   : > { %390 = vrot.lane.b32.xlu0 %v2089_v1, %s1936_s26  ;;  %800 = vrot.lane.b32.xlu1 %v2089_v1, %s1937_s27 }
  0x4d   : > { %392 = vrot.lane.b32.xlu0 %v2092_v2, %s1936_s26  ;;  %802 = vrot.lane.b32.xlu1 %v2092_v2, %s1937_s27 }
  0x51   : > { %394 = vrot.lane.b32.xlu0 %v2094_v3, %s1936_s26  ;;  %804 = vrot.lane.b32.xlu1 %v2094_v3, %s1937_s27 }
  0x55   : > { %884 = vrot.lane.b32.xlu0 %v2087_v0, %s1938_s28  ;;  %886 = vrot.lane.b32.xlu1 %v2089_v1, %s1938_s28 }
  0x59   : > { %888 = vrot.lane.b32.xlu0 %v2092_v2, %s1938_s28  ;;  %890 = vrot.lane.b32.xlu1 %v2094_v3, %s1938_s28 }
  0x5d   : > { %540 = vrot.lane.b32.xlu0 %v2087_v0, %s1939_s11  ;;  %970 = vrot.lane.b32.xlu1 %v2087_v0, %s1940_s13 }
  0x61   : > { %542 = vrot.lane.b32.xlu0 %v2089_v1, %s1939_s11  ;;  %972 = vrot.lane.b32.xlu1 %v2089_v1, %s1940_s13 }
  0x65   : > { %544 = vrot.lane.b32.xlu0 %v2092_v2, %s1939_s11  ;;  %974 = vrot.lane.b32.xlu1 %v2092_v2, %s1940_s13 }
  0x69   : > { %546 = vrot.lane.b32.xlu0 %v2094_v3, %s1939_s11  ;;  %976 = vrot.lane.b32.xlu1 %v2094_v3, %s1940_s13 }
  0x6d   : > { %626 = vrot.lane.b32.xlu0 %v2087_v0, %s1941_s14  ;;  %1056 = vrot.lane.b32.xlu1 %v2087_v0, %s1942_s19 }
  0x71   : > { %628 = vrot.lane.b32.xlu0 %v2089_v1, %s1941_s14  ;;  %1058 = vrot.lane.b32.xlu1 %v2089_v1, %s1942_s19 }
  0x75   : > { %630 = vrot.lane.b32.xlu0 %v2092_v2, %s1941_s14  ;;  %1060 = vrot.lane.b32.xlu1 %v2092_v2, %s1942_s19 }
  0x79   : > { %632 = vrot.lane.b32.xlu0 %v2094_v3, %s1941_s14  ;;  %1062 = vrot.lane.b32.xlu1 %v2094_v3, %s1942_s19 }
  0x7d   : > { %1133 = vperm.xlu0 %1808, %v1127_v6   ;;  %1138 = vperm.xlu1 %1809, %v1128_v8  }
  0x81   : > { %1143 = vperm.xlu0 %1808, %v1129_v9  }
  0x85   : > { %1148 = vperm.xlu0 %1808, %v1130_v10  }
  0xaf   : > { %v713_v11 = vpop.permute.xlu0 %712  ;;  %v717_v12 = vpop.permute.xlu1 %716 }
  0xb0   : > { %1640 = vmatprep.subr.bf16.mxu0 %v713_v11 }
  0xb1   : > { %1641 = vmatpush3.bf16.msra.mxu0 %v713_v11  ;;  %v2170_v11 = vld [vmem:[%s2326_s7] ss:$0 sm:$0xff] }
  0xb3   : > { %v715_v13 = vpop.permute.xlu0 %714  ;;  %v719_v14 = vpop.permute.xlu1 %718 }
  0xb4   : > { %1642 = vmatprep.subr.bf16.mxu0 %v715_v13 }
  0xb5   : > { %1643 = vmatpush3.bf16.msra.mxu0 %v715_v13 }
  0xb6   : > { %1644 = vmatprep.subr.bf16.mxu0 %v717_v12 }
  0xb7   : > { %v389_v15 = vpop.permute.xlu0 %388  ;;  %v799_v16 = vpop.permute.xlu1 %798 }
  0xb8   : > { %1592 = vmatprep.subr.bf16.mxu1 %v389_v15 }
  0xb9   : > { %1593 = vmatpush3.bf16.msra.mxu1 %v389_v15  ;;  %1645 = vmatpush3.bf16.msra.mxu0 %v717_v12 }
  0xba   : > { %1646 = vmatprep.subr.bf16.mxu0 %v719_v14 }
  0xbb   : > { %v391_v17 = vpop.permute.xlu0 %390  ;;  %v801_v19 = vpop.permute.xlu1 %800 }
  0xbc   : > { %1594 = vmatprep.subr.bf16.mxu1 %v391_v17 }
  0xbd   : > { %1595 = vmatpush3.bf16.msra.mxu1 %v391_v17  ;;  %1647 = vmatpush3.bf16.msra.mxu0 %v719_v14 }
  0xbe   : > { %1652 = vmatprep.subr.bf16.mxu0 %v799_v16 }
  0xbf   : > { %v393_v21 = vpop.permute.xlu0 %392  ;;  %v803_v22 = vpop.permute.xlu1 %802 }
  0xc0   : > { %1596 = vmatprep.subr.bf16.mxu1 %v393_v21  ;;  %1649 = vmatmul.mubr.msk.bf16.vlgmr.msra.gmra.mrb[0].mxu0 %vm400_vm0, %v1815_v18 }
  0xc1   : > { %1597 = vmatpush3.bf16.msra.mxu1 %v393_v21  ;;  %1653 = vmatpush3.bf16.msra.mxu0 %v799_v16 }
  0xc2   : > { %1654 = vmatprep.subr.bf16.mxu0 %v801_v19  ;;  %1660 = vmatprep.mubr.msk.bf16.mxu0 %vm400_vm0, %v1818_v20 }
  0xc3   : > { %v395_v23 = vpop.permute.xlu0 %394  ;;  %v805_v25 = vpop.permute.xlu1 %804 }
  0xc4   : > { %1598 = vmatprep.subr.bf16.mxu1 %v395_v23 }
  0xc5   : > { %1599 = vmatpush3.bf16.msra.mxu1 %v395_v23  ;;  %1655 = vmatpush3.bf16.msra.mxu0 %v801_v19 }
  0xc6   : > { %1604 = vmatprep.subr.bf16.mxu1 %v2087_v0  ;;  %1656 = vmatprep.subr.bf16.mxu0 %v803_v22 }
  0xc7   : > { %v885_v26 = vpop.permute.xlu0 %884  ;;  %v887_v28 = vpop.permute.xlu1 %886 }
  0xc8   : > { %1601 = vmatmul.mubr.msk.bf16.vlgmr.msra.gmra.mrb[0].mxu1 %vm400_vm0, %v1817_v24 }
  0xc9   : > { %1605 = vmatpush3.bf16.msra.mxu1 %v2087_v0  ;;  %1657 = vmatpush3.bf16.msra.mxu0 %v803_v22 }
  0xca   : > { %1606 = vmatprep.subr.bf16.mxu1 %v2089_v1  ;;  %1658 = vmatprep.subr.bf16.mxu0 %v805_v25 }
  0xcb   : > { %v889_v29 = vpop.permute.xlu0 %888  ;;  %1612 = vmatprep.mubr.msk.bf16.mxu1 %vm400_vm0, %v1820_v27  ;;  %v891_v31 = vpop.permute.xlu1 %890 }
  0xcd   : > { %1607 = vmatpush3.bf16.msra.mxu1 %v2089_v1  ;;  %1659 = vmatpush3.bf16.msra.mxu0 %v805_v25 }
  0xce   : > { %1608 = vmatprep.subr.bf16.mxu1 %v2092_v2  ;;  %1664 = vmatprep.subr.bf16.mxu0 %v885_v26 }
  0xcf   : > { %v541_v32 = vpop.permute.xlu0 %540  ;;  %v971_v34 = vpop.permute.xlu1 %970 }
  0xd0   : > { %1661 = vmatmul.mubr.msk.bf16.vlgmr.msra.gmra.mrb[0].mxu0 %vm400_vm0, %v1819_v30 }
  0xd1   : > { %1609 = vmatpush3.bf16.msra.mxu1 %v2092_v2  ;;  %1665 = vmatpush3.bf16.msra.mxu0 %v885_v26 }
  0xd2   : > { %1610 = vmatprep.subr.bf16.mxu1 %v2094_v3  ;;  %1666 = vmatprep.subr.bf16.mxu0 %v887_v28 }
  0xd3   : > { %v543_v35 = vpop.permute.xlu0 %542  ;;  %1672 = vmatprep.mubr.msk.bf16.mxu0 %vm400_vm0, %v1822_v33  ;;  %v973_v37 = vpop.permute.xlu1 %972 }
  0xd5   : > { %1611 = vmatpush3.bf16.msra.mxu1 %v2094_v3  ;;  %1667 = vmatpush3.bf16.msra.mxu0 %v887_v28 }
  0xd6   : > { %1616 = vmatprep.subr.bf16.mxu1 %v541_v32  ;;  %1668 = vmatprep.subr.bf16.mxu0 %v889_v29 }
  0xd7   : > { %v545_v38 = vpop.permute.xlu0 %544  ;;  %v975_v40 = vpop.permute.xlu1 %974 }
  0xd8   : > { %1613 = vmatmul.mubr.msk.bf16.vlgmr.msra.gmra.mrb[0].mxu1 %vm400_vm0, %v1821_v36 }
  0xd9   : > { %1617 = vmatpush3.bf16.msra.mxu1 %v541_v32  ;;  %1669 = vmatpush3.bf16.msra.mxu0 %v889_v29 }
  0xda   : > { %1618 = vmatprep.subr.bf16.mxu1 %v543_v35  ;;  %1670 = vmatprep.subr.bf16.mxu0 %v891_v31 }
  0xdb   : > { %v547_v41 = vpop.permute.xlu0 %546  ;;  %1624 = vmatprep.mubr.msk.bf16.mxu1 %vm400_vm0, %v1824_v39  ;;  %v977_v44 = vpop.permute.xlu1 %976 }
  0xdd   : > { %1619 = vmatpush3.bf16.msra.mxu1 %v543_v35  ;;  %1671 = vmatpush3.bf16.msra.mxu0 %v891_v31 }
  0xde   : > { %1620 = vmatprep.subr.bf16.mxu1 %v545_v38  ;;  %1676 = vmatprep.subr.bf16.mxu0 %v971_v34 }
  0xdf   : > { %v627_v43 = vpop.permute.xlu0 %626  ;;  %v1057_v48 = vpop.permute.xlu1 %1056 }
  0xe0   : > { %1673 = vmatmul.mubr.msk.bf16.vlgmr.msra.gmra.mrb[0].mxu0 %vm400_vm0, %v1823_v42 }
  0xe1   : > { %1621 = vmatpush3.bf16.msra.mxu1 %v545_v38  ;;  %1677 = vmatpush3.bf16.msra.mxu0 %v971_v34 }
  0xe2   : > { %1622 = vmatprep.subr.bf16.mxu1 %v547_v41  ;;  %1678 = vmatprep.subr.bf16.mxu0 %v973_v37 }
  0xe3   : > { %v629_v46 = vpop.permute.xlu0 %628  ;;  %1684 = vmatprep.mubr.msk.bf16.mxu0 %vm400_vm0, %v1826_v45  ;;  %v1059_v51 = vpop.permute.xlu1 %1058 }
  0xe5   : > { %1623 = vmatpush3.bf16.msra.mxu1 %v547_v41  ;;  %1679 = vmatpush3.bf16.msra.mxu0 %v973_v37 }
  0xe6   : > { %1628 = vmatprep.subr.bf16.mxu1 %v627_v43  ;;  %1680 = vmatprep.subr.bf16.mxu0 %v975_v40 }
  0xe7   : > { %v631_v50 = vpop.permute.xlu0 %630  ;;  %v1061_v55 = vpop.permute.xlu1 %1060 }
  0xe8   : > { %1625 = vmatmul.mubr.msk.bf16.vlgmr.msra.gmra.mrb[0].mxu1 %vm400_vm0, %v1825_v47 }
  0xe9   : > { %1629 = vmatpush3.bf16.msra.mxu1 %v627_v43  ;;  %1681 = vmatpush3.bf16.msra.mxu0 %v975_v40 }
  0xea   : > { %1630 = vmatprep.subr.bf16.mxu1 %v629_v46  ;;  %1682 = vmatprep.subr.bf16.mxu0 %v977_v44 }
  0xeb   : > { %1636 = vmatprep.mubr.msk.bf16.mxu1 %vm400_vm0, %v1828_v49  ;;  %v633_v53 = vpop.permute.xlu0 %632  ;;  %v1063_v57 = vpop.permute.xlu1 %1062 }
  0xed   : > { %1631 = vmatpush3.bf16.msra.mxu1 %v629_v46  ;;  %1683 = vmatpush3.bf16.msra.mxu0 %v977_v44 }
  0xee   : > { %1632 = vmatprep.subr.bf16.mxu1 %v631_v50  ;;  %1688 = vmatprep.subr.bf16.mxu0 %v1057_v48 }
  0xf0   : > { %1685 = vmatmul.mubr.msk.bf16.vlgmr.msra.gmra.mrb[0].mxu0 %vm400_vm0, %v1827_v52 }
  0xf1   : > { %1633 = vmatpush3.bf16.msra.mxu1 %v631_v50  ;;  %1689 = vmatpush3.bf16.msra.mxu0 %v1057_v48 }
  0xf2   : > { %1634 = vmatprep.subr.bf16.mxu1 %v633_v53  ;;  %1690 = vmatprep.subr.bf16.mxu0 %v1059_v51 }
  0xf3   : > { %1696 = vmatprep.mubr.msk.bf16.mxu0 %vm400_vm0, %v1830_v54 }
  0xf5   : > { %1635 = vmatpush3.bf16.msra.mxu1 %v633_v53  ;;  %1691 = vmatpush3.bf16.msra.mxu0 %v1059_v51 }
  0xf6   : > { %1692 = vmatprep.subr.bf16.mxu0 %v1061_v55 }
  0xf8   : > { %1637 = vmatmul.mubr.msk.bf16.vlgmr.msra.gmra.mrb[0].mxu1 %vm400_vm0, %v1829_v56 }
  0xf9   : > { %1693 = vmatpush3.bf16.msra.mxu0 %v1061_v55 }
  0xfa   : > { %1694 = vmatprep.subr.bf16.mxu0 %v1063_v57 }
  0xfc   : > { %v1134_v59 = vpop.permute.xlu0 %1133  ;;  %v1139_v10 = vpop.permute.xlu1 %1138 }
  0xfd   : > { %1695 = vmatpush3.bf16.msra.mxu0 %v1063_v57 }
 0x100   : > { %1697 = vmatmul.mubr.msk.bf16.vlgmr.msra.gmra.mrb[0].mxu0 %vm400_vm0, %v1831_v58  ;;  %v1144_v0 = vpop.permute.xlu0 %1143 }
 0x104   : > { %v1149_v6 = vpop.permute.xlu0 %1148 }
 0x1cb   : > { %v1638_v60 = vpop.f32.mrb[0].mxu1 }
 0x1cc   : > { %v678_v61 = vpop.f32.mrb[1].mxu1 }
 0x1cd   : > { %v1639_v62 = vpop.f32.mrb[2].mxu1 }
 0x1ce   : > { %v681_v63 = vpop.f32.mrb[3].mxu1 }
 0x1d3   : > { %v1698_v1 = vpop.f32.mrb[0].mxu0 }
 0x1d4   : > { %v1700_v2 = vadd.f32 %v1698_v1, %v1638_v60  ;;  %v1108_v3 = vpop.f32.mrb[1].mxu0  ;;  %v1207_v60 = vld [vmem:[%s2323_s4] sm:$0xff]  ;;  %v1213_v1 = vld [vmem:[%s2324_s5 + $0x8] sm:$0xff] }
 0x1d5   : > { %v1701_v4 = vadd.f32 %v1108_v3, %v678_v61  ;;  %v1699_v5 = vpop.f32.mrb[2].mxu0  ;;  %v1208_v61 = vld [vmem:[%s2323_s4 + $0x8] sm:$0xff] }
 0x1d6   : > { %v1702_v8 = vadd.f32 %v1699_v5, %v1639_v62  ;;  %v1111_v9 = vpop.f32.mrb[3].mxu0  ;;  %v2176_v15 = vadd.f32 %v1700_v2, %v1144_v0 }
 0x1d7   : > { %v2172_v12 = vadd.f32 %v1701_v4, %v1134_v59  ;;  %v1703_v13 = vadd.f32 %v1111_v9, %v681_v63 }
 0x1d8   : > { %v2174_v14 = vadd.f32 %v1702_v8, %v1149_v6  ;;  %v1266_v22 = vmul.f32 %v2170_v11, %v2176_v15 }
 0x1d9   : > { %v2178_v16 = vadd.f32 %v1703_v13, %v1139_v10  ;;  %v1167_v17 = vmul.f32 %v2170_v11, %v2172_v12 }
 0x1da   : > { %v1267_v19 = vmul.f32 %v2170_v11, %v2174_v14  ;;  %v1268_v25 = vsel %vm1169_vm1, %v1266_v22, 0.0 }
 0x1db   : > { %v1168_v18 = vmul.f32 %v2170_v11, %v2178_v16  ;;  %v1170_v20 = vsel %vm1169_vm1, %v1167_v17, 0.0 }
 0x1dc   : > { %v1269_v24 = vsel %vm1169_vm1, %v1267_v19, 0.0 }
 0x1dd   : > { %v1171_v21 = vsel %vm1169_vm1, %v1168_v18, 0.0  ;;  %v1270_v26 = vadd.f32 %v1269_v24, %v1268_v25 }
 0x1de   : > { %v1172_v23 = vadd.f32 %v1171_v21, %v1170_v20  ;;  %v1212_v21 = vld [vmem:[%s2324_s5] sm:$0xff] }
 0x1e0   : > { %1173 = vadd.xlane.f32.xlu1 %v1172_v23 }
 0x1e4   : > { %1271 = vadd.xlane.f32.xlu1 %v1270_v26 }
 0x26d   : > { %v1174_v27 = vpop.xlane.xlu1 %1173 }
 0x26e   : > { %v1175_v28 = vrot.slane %v1174_v27, 4 }
 0x270   : > { %v1176_v29 = vadd.f32 %v1175_v28, %v1174_v27 }
 0x271   : > { %v1272_v51 = vpop.xlane.xlu1 %1271 }
 0x272   : > { %v1177_v30 = vrot.slane %v1176_v29, 2  ;;  %v1273_v52 = vrot.slane %v1272_v51, 4 }
 0x274   : > { %v1178_v31 = vadd.f32 %v1177_v30, %v1176_v29  ;;  %v1274_v53 = vadd.f32 %v1273_v52, %v1272_v51 }
 0x276   : > { %v1179_v32 = vrot.slane %v1178_v31, 1  ;;  %v1275_v54 = vrot.slane %v1274_v53, 2 }
 0x278   : > { %v1180_v33 = vadd.f32 %v1179_v32, %v1178_v31  ;;  %v1276_v56 = vadd.f32 %v1275_v54, %v1274_v53 }
 0x27a   : > { %1732 = vpush %v1180_v33  ;;  %v1277_v57 = vrot.slane %v1276_v56, 1 }
 0x27c   : > { %v1278_v59 = vadd.f32 %v1277_v57, %v1276_v56 }
 0x2ab   : > { %s1733_s13 = spop %1732 }
 0x2ac   : > { %s1182_s14 = smul.f32 0.0009765625, %s1733_s13 }
 0x2ae   : > { %v1183_v34 = vstv %s1182_s14  ;;  %s2268_s14 = scalar_lea.hbm %s2327_s8, %s1537_s23 }
 0x2af   : > { %v1184_v35 = vsub.f32 %v2172_v12, %v1183_v34  ;;  %v1185_v36 = vsub.f32 %v2178_v16, %v1183_v34 }
 0x2b1   : > { %v1186_v37 = vmul.f32 %v2170_v11, %v1184_v35  ;;  %v1187_v38 = vmul.f32 %v2170_v11, %v1185_v36 }
 0x2b3   : > { %v1188_v39 = vmul.f32 %v1186_v37, %v1186_v37  ;;  %v1189_v40 = vmul.f32 %v1187_v38, %v1187_v38 }
 0x2b5   : > { %v1190_v41 = vsel %vm1169_vm1, %v1188_v39, 0.0  ;;  %v1191_v42 = vsel %vm1169_vm1, %v1189_v40, 0.0  ;;  %v1244_v40 = vstv %s1156_s25  ;;  %s1944_s25 = smov 11  }
 0x2b6   : > { %v1192_v43 = vadd.f32 %v1191_v42, %v1190_v41 }
 0x2b8   : > { %1193 = vadd.xlane.f32.xlu0 %v1192_v43  ;;  %v1305_v43 = vld [vmem:[%s2323_s4 + $0x10] sm:$0xff] }
 0x345   : > { %v1194_v44 = vpop.xlane.xlu0 %1193 }
 0x346   : > { %v1195_v45 = vrot.slane %v1194_v44, 4 }
 0x348   : > { %v1196_v46 = vadd.f32 %v1195_v45, %v1194_v44  ;;  %v1306_v44 = vld [vmem:[%s2323_s4 + $0x18] sm:$0xff] }
 0x34a   : > { %v1197_v47 = vrot.slane %v1196_v46, 2 }
 0x34c   : > { %v1198_v48 = vadd.f32 %v1197_v47, %v1196_v46  ;;  %v1311_v47 = vld [vmem:[%s2324_s5 + $0x18] sm:$0xff] }
 0x34e   : > { %v1199_v49 = vrot.slane %v1198_v48, 1 }
 0x350   : > { %v1200_v50 = vadd.f32 %v1199_v49, %v1198_v48  ;;  %v1310_v48 = vld [vmem:[%s2324_s5 + $0x10] sm:$0xff] }
 0x352   : > { %1734 = vpush %v1200_v50 }
 0x383   : > { %s1735_s19 = spop %1734 }
 0x384   : > { %s1202_s22 = smul.f32 0.0009765625, %s1735_s19 }
 0x386   : > { %s1203_s21 = sadd.f32 1e-05, %s1202_s22 }
 0x388   : > { %v1204_v55 = vstv %s1203_s21 }
 0x389   : > { %1832 = vrsqrt.f32 %v1204_v55 }
 0x393   : > { %v1833_v58 = vpop.eup %1832 }
 0x394   : > { %1736 = vpush %v1833_v58 }
 0x395   : > { %1738 = vpush %v1278_v59 }
 0x3c5   : > { %s1737_s26 = spop %1736 }
 0x3c6   : > { %v1209_v62 = vstv %s1737_s26  ;;  %s1739_s27 = spop %1738 }
 0x3c7   : > { %v1210_v63 = vmul.f32 %v1209_v62, %v1207_v60  ;;  %v1211_v0 = vmul.f32 %v1209_v62, %v1208_v61  ;;  %s1280_s28 = smul.f32 0.0009765625, %s1739_s27  ;;  %s339_s27 = scalar_lea.vmem %s2320_s1, %s1532_s20 }
 0x3c8   : > { %v1362_v60 = vld [vmem:[%s339_s27] sm:$0xff]   ;;  %v1364_v61 = vld [vmem:[%s339_s27 + $0x8] sm:$0xff]  }
 0x3c9   : > { %v1215_v2 = vmul.f32 %v1211_v0, %v1183_v34  ;;  %v1281_v3 = vstv %s1280_s28  ;;  %1220 = vperm.xlu0 %1808, %v1210_v63   ;;  %v1214_v20 = vmul.f32 %v1210_v63, %v1183_v34 }
 0x3ca   : > { %v1282_v4 = vsub.f32 %v2176_v15, %v1281_v3  ;;  %v1283_v5 = vsub.f32 %v2174_v14, %v1281_v3 }
 0x3cb   : > { %v1217_v6 = vsub.f32 %v1213_v1, %v1215_v2  ;;  %v1216_v22 = vsub.f32 %v1212_v21, %v1214_v20 }
 0x3cc   : > { %v1284_v8 = vmul.f32 %v2170_v11, %v1282_v4  ;;  %v1285_v9 = vmul.f32 %v2170_v11, %v1283_v5 }
 0x3cd   : > { %1237 = vperm.xlu0 %1808, %v1217_v6  }
 0x3ce   : > { %v1286_v10 = vmul.f32 %v1284_v8, %v1284_v8  ;;  %v1287_v13 = vmul.f32 %v1285_v9, %v1285_v9 }
 0x3d0   : > { %v1288_v17 = vsel %vm1169_vm1, %v1286_v10, 0.0  ;;  %v1289_v18 = vsel %vm1169_vm1, %v1287_v13, 0.0 }
 0x3d1   : > { %v1290_v19 = vadd.f32 %v1289_v18, %v1288_v17 }
 0x3d3   : > { %1291 = vadd.xlane.f32.xlu1 %v1290_v19 }
 0x3e4   : > { %1225 = vperm.xlu1 %1809, %v1211_v0  }
 0x3e8   : > { %1232 = vperm.xlu1 %1809, %v1216_v22  }
 0x448   : > { %v1221_v33 = vpop.permute.xlu0 %1220 }
 0x449   : > { %v1228_v36 = vmul.f32 %v1221_v33, %v2172_v12 }
 0x44c   : > { %v1238_v37 = vpop.permute.xlu0 %1237 }
 0x460   : > { %v1292_v23 = vpop.xlane.xlu1 %1291 }
 0x461   : > { %v1293_v24 = vrot.slane %v1292_v23, 4 }
 0x463   : > { %v1294_v25 = vadd.f32 %v1293_v24, %v1292_v23 }
 0x464   : > { %v1226_v32 = vpop.permute.xlu1 %1225 }
 0x465   : > { %v1295_v26 = vrot.slane %v1294_v25, 2  ;;  %v1229_v34 = vmul.f32 %v1226_v32, %v2178_v16 }
 0x467   : > { %v1296_v27 = vadd.f32 %v1295_v26, %v1294_v25  ;;  %v1241_v38 = vadd.f32 %v1238_v37, %v1229_v34 }
 0x468   : > { %v1233_v35 = vpop.permute.xlu1 %1232 }
 0x469   : > { %v1297_v28 = vrot.slane %v1296_v27, 1  ;;  %v1240_v39 = vadd.f32 %v1233_v35, %v1228_v36  ;;  %v1246_v41 = vmul.f32 %v1244_v40, %v1241_v38  ;;  %vm1243_vm2 = vcmp.ge.f32.partialorder %v1241_v38, 0.0 }
 0x46b   : > { %v1298_v29 = vadd.f32 %v1297_v28, %v1296_v27  ;;  %v1245_v42 = vmul.f32 %v1244_v40, %v1240_v39  ;;  %vm1242_vm3 = vcmp.ge.f32.partialorder %v1240_v39, 0.0  ;;  %v1248_v49 = vsel %vm1243_vm2, %v1241_v38, %v1246_v41 }
 0x46c   : > { %v1250_v54 = vmul.f32 %v2170_v11, %v1248_v49 }
 0x46d   : > { %1740 = vpush %v1298_v29  ;;  %v1247_v46 = vsel %vm1242_vm3, %v1240_v39, %v1245_v42 }
 0x46e   : > { %v1249_v55 = vmul.f32 %v2170_v11, %v1247_v46  ;;  %v1534_v56 = vpack.c.bf16 %v1250_v54, %v1250_v54 }
 0x470   : > { %v1533_v57 = vpack.c.bf16 %v1249_v55, %v1249_v55 }
 0x49e   : > { %s1741_s22 = spop %1740 }
 0x49f   : > { %s1300_s21 = smul.f32 0.0009765625, %s1741_s22  ;;  %s327_s22 = sand.u32 1, %s1922_s30  }
 0x4a0   : > { %s2278_s19 = scalar_lea.sflag [#allocation5], %s327_s22 }
 0x4a1   : > { %s1301_s24 = sadd.f32 1e-05, %s1300_s21  ;;  %s1476_s21 = sshll.u32 %s327_s22, 5 }
 0x4a3   : > { %v1302_v30 = vstv %s1301_s24  ;;  %s2235_s24 = scalar_lea.vmem [#allocation6], %s1476_s21  ;;  %s1945_s21 = smov [#allocation6]  }
 0x4a4   : > { %1834 = vrsqrt.f32 %v1302_v30  ;;  %1158 = vst [vmem:[%s2235_s24 + $0x4] sm:$0xf] %v1943_v7  ;;  %1157 = vst [vmem:[%s2235_s24] sm:$0xf] %v1943_v7 }
 0x4a5   : > { %1159 = vst [vmem:[%s2235_s24 + $0x8] sm:$0xf] %v1943_v7  ;;  %1160 = vst [vmem:[%s2235_s24 + $0xc] sm:$0xf] %v1943_v7 }
 0x4a6   : > { %1366 = vst [vmem:[%s2235_s24 + $0x10] sm:$0xff] %v1362_v60   ;;  %1368 = vst [vmem:[%s2235_s24 + $0x18] sm:$0xff] %v1364_v61  }
 0x4ae   : > { %v1835_v31 = vpop.eup %1834 }
 0x4af   : > { %1742 = vpush %v1835_v31 }
 0x4e0   : > { %s1743_s28 = spop %1742 }
 0x4e1   : > { %v1307_v16 = vstv %s1743_s28  ;;  %s1384_s28 = sshll.u32 %s2235_s24, 4  ;;  %s2270_s28 = int_to_ptr.vmem [resolvable:$true] %s1384_s28 }
 0x4e2   : > { %v1308_v45 = vmul.f32 %v1307_v16, %v1305_v43  ;;  %v1309_v12 = vmul.f32 %v1307_v16, %v1306_v44  ;;  %s1864_s6 = scalar_lea.vmem %s2270_s28, 512 }
 0x4e3   : > { %p1865_p6 = scmp.ne.s32.totalorder %s2270_s28, %s1864_s6 }
 0x4e4   : > { %v1312_v50 = vmul.f32 %v1308_v45, %v1281_v3  ;;  %v1313_v51 = vmul.f32 %v1309_v12, %v1281_v3  ;;  %1323 = vperm.xlu0 %1808, %v1309_v12   ;;  %1318 = vperm.xlu1 %1809, %v1308_v45  }
 0x4e5   : > { %p1866_p10 = pnand %p1865_p6, %p2338_p9 }
 0x4e6   : > { %v1315_v52 = vsub.f32 %v1311_v47, %v1313_v51  ;;  %v1314_v53 = vsub.f32 %v1310_v48, %v1312_v50 }
 0x4e7   : > { %p1867_p12 = pneg %p1866_p10 }
 0x4e8   : > { %1335 = vperm.xlu0 %1808, %v1315_v52   ;;  %1330 = vperm.xlu1 %1809, %v1314_v53  }
 0x4ec   : > { %1259 = vrot.lane.b32.xlu0 %v1534_v56, %s1944_s25  ;;  %1257 = vrot.lane.b32.xlu1 %v1533_v57, %s1944_s25 }
 0x563   : > { %v1324_v58 = vpop.permute.xlu0 %1323  ;;  %v1319_v59 = vpop.permute.xlu1 %1318 }
 0x564   : > { %v1327_v62 = vmul.f32 %v1324_v58, %v2174_v14  ;;  %v1326_v7 = vmul.f32 %v1319_v59, %v2176_v15 }
 0x567   : > { %v1336_v63 = vpop.permute.xlu0 %1335  ;;  %v1331_v0 = vpop.permute.xlu1 %1330 }
 0x568   : > { %v1339_v1 = vadd.f32 %v1336_v63, %v1327_v62  ;;  %v1338_v2 = vadd.f32 %v1331_v0, %v1326_v7 }
 0x56a   : > { %vm1341_vm5 = vcmp.ge.f32.partialorder %v1339_v1, 0.0  ;;  %v1343_v3 = vmul.f32 %v1339_v1, %v1244_v40  ;;  %vm1340_vm6 = vcmp.ge.f32.partialorder %v1338_v2, 0.0  ;;  %v1342_v4 = vmul.f32 %v1338_v2, %v1244_v40 }
 0x56b   : > { %v1260_v5 = vpop.permute.xlu0 %1259  ;;  %v1258_v6 = vpop.permute.xlu1 %1257 }
 0x56c   : > { %v1345_v8 = vsel %vm1341_vm5, %v1339_v1, %v1343_v3  ;;  %v1344_v9 = vsel %vm1340_vm6, %v1338_v2, %v1342_v4  ;;  %1265 = vst.msk [vmem:[%s2235_s24 + $0x4] sm:$0xf] %vm1263_vm4, %v1260_v5  ;;  %1264 = vst.msk [vmem:[%s2235_s24] sm:$0xf] %vm1263_vm4, %v1258_v6 }
 0x56d   : > { %v1347_v14 = vmul.f32 %v2170_v11, %v1345_v8  ;;  %v1346_v15 = vmul.f32 %v2170_v11, %v1344_v9 }
 0x56f   : > { %v1536_v10 = vpack.c.bf16 %v1347_v14, %v1347_v14  ;;  %v1535_v13 = vpack.c.bf16 %v1346_v15, %v1346_v15 }
 0x571   : > { %1356 = vrot.lane.b32.xlu0 %v1536_v10, %s1944_s25  ;;  %1354 = vrot.lane.b32.xlu1 %v1535_v13, %s1944_s25  ;;  %s1868_s25 = sshll.u32 %s1945_s21, 4  ;;  %s1869_s25 = int_to_ptr.vmem [resolvable:$false] %s1868_s25 }
 0x572   : > { %s1870_s20 = scalar_lea.vmem %s1869_s25, 1024  ;;  %p1871_p2 = scmp.lt.s32.totalorder %s2270_s28, %s1869_s25 }
 0x573   : > { %p1872_p3 = scmp.lt.s32.totalorder %s1870_s20, %s1864_s6 }
 0x575   : > { %p1873_p4 = por %p1872_p3, %p1871_p2 }
 0x577   : > { %p1874_p7 = pnand %p1873_p4, %p1867_p12 }
 0x5e3   : > { %v1357_v11 = vpop.permute.xlu0 %1356  ;;  %v1355_v17 = vpop.permute.xlu1 %1354 }
 0x5e4   : > { %1361 = vst.msk [vmem:[%s2235_s24 + $0xc] sm:$0xf] %vm1263_vm4, %v1357_v11  ;;  %1360 = vst.msk [vmem:[%s2235_s24 + $0x8] sm:$0xf] %vm1263_vm4, %v1355_v17 }
 0x5e5   : > { %1877 = shalt.err (!%p1874_p7)
}
 0x5e6   : > { %s1878_s22 = scalar_lea.hbm %s2268_s14, 512  ;;  %s1882_s26 = scalar_lea.hbm %s2327_s8, 1024 }
 0x5e7   : > { %p1879_p8 = scmp.ne.s32.totalorder %s2268_s14, %s1878_s22  ;;  %p1883_p1 = scmp.lt.u32.totalorder %s2268_s14, %s2327_s8 }
 0x5e8   : > { %p1884_p0 = scmp.lt.u32.totalorder %s1882_s26, %s1878_s22  ;;  %p1886_p6 = scmp.lt.u32.totalorder %s1878_s22, %s2268_s14 }
 0x5e9   : > { %p1880_p11 = pnand %p1879_p8, %p2338_p9 }
 0x5ea   : > { %p1885_p5 = por %p1884_p0, %p1883_p1 }
 0x5eb   : > { %p1881_p13 = pneg %p1880_p11 }
 0x5ec   : > { %p1887_p10 = por %p1886_p6, %p1885_p5 }
 0x5ee   : > { %p1888_p12 = pnand %p1887_p10, %p1881_p13 }
 0x5f0   : > { %1891 = shalt.err (!%p1888_p12)
}
 0x5f1   : > { %s1946_s11 = smov 64   ;;  %s1947_s13 = smov 4  }
 0x5f2   : > { %1748 = dma.vmem_to_hbm [thread:$0]  (%p2338_p9), %s2270_s28, 512, %s2268_s14, %s2278_s19, %s1946_s11, %s1946_s11, %s1947_s13  }
 0x5f3 PF: > { %p1760_p2 = scmp.ge.s32.totalorder %s1930_s10, 2  ;;  %s1399_s6 = sand.u32 1, %s1918_s29  }
 0x5f4   : > { %p2339_p3 = scmp.ne.s32.totalorder %s2332_s17, 0  ;;  %s1400_s21 = scalar_lea.sflag [#allocation5], %s1399_s6 }
 0x5f6   : > { %p1755_p4 = pnand %p1760_p2, %p2339_p3 }
 0x5f8   : > { %1913 = dma.done.wait (!%p1755_p4), %s1400_s21, 512  }
 0x5f9   : > { %1915 = vsyncadd (!%p1755_p4), %s1400_s21, 4294966784  ;;  %p20_p7 = scmp.ge.s32.totalorder %s2021_s12, 4   ;;  %s2340_s29 = smov %s1922_s30 }
 0x5fa   : > { %s2341_s30 = smov %s1926_s9  ;;  %s2342_s9 = smov %s2032_s15 }
 0x5fb   : > { %s2343_s10 = smov %s2021_s12  ;;  %22 = sbr.rel (!%p20_p7) target bundleno = 6 (0x6), region = 103 }
 0x602   :  { %1405 = vsyncpa [#allocation4], 1 }
 0x603   :  { %1407 = vsyncpa [#allocation4 + $0x1], 1 }
 0x604   :  { %1408 = vsyncpa [#allocation5], 1 }
 0x605   :  { %1410 = vsyncpa [#allocation5 + $0x1], 1 }

</bundles_post_ra>
